<compile_context>
chip_gen: v7x
topology: tpu7x:2x2x1
jax: 0.10.0
libtpu: 0.0.40
codegen_flags: <defaults>
</compile_context>

<pallas_src>
import jax
import jax.numpy as jnp
from jax.experimental import pallas as pl
from jax.experimental.pallas import tpu as pltpu

# ---------------- model dims (small, consistent with the module) -------------
B = 2           # batch
S = 8           # sequence length
H = 32          # hidden_size (stand-in for 768)
C = 7           # num_classes
VOCAB = 100
N_SEG = 2
DR_RATE = None  # module default -> dropout branch skipped

# ---------------- tiled kernel dims -------------------------------------------
CP = 128        # classes lane-padded to full lane width (sliced back to C outside)
B_TILE = 8      # batch rows per kernel invocation (full sublane group)


# ------------------------------ Pallas kernel --------------------------------
def bert_classifier_kernel(vlen_ref, inv_ref, x_ref, wp_ref, bp_ref,
                           wc_ref, bc_ref, out_ref):
    """Fused mask-gen -> masked mean pool (MXU) -> pooler tanh -> classifier.

    vlen_ref : (B_TILE, 1)     int32  valid lengths
    inv_ref  : (B_TILE, 1)     f32    exact 1 / max(valid_length, 1)
    x_ref    : (B_TILE*S, H)   f32    token+segment embeddings (rows flattened)
    wp_ref   : (H, H)          f32    pooler weight
    bp_ref   : (1, H)          f32    pooler bias
    wc_ref   : (H, CP)         f32    classifier weight (lane-padded)
    bc_ref   : (1, CP)         f32    classifier bias  (lane-padded)
    out_ref  : (B_TILE, CP)    f32    lane-dense logits tile
    """
    # gen_attention_mask + mean-pool fold, fully vectorized:
    #   pool_mat[b, b*S + s] = 1/valid_len[b] if s < valid_len[b] else 0
    row_i = jax.lax.broadcasted_iota(jnp.int32, (B_TILE, B_TILE * S), 0)
    col_i = jax.lax.broadcasted_iota(jnp.int32, (B_TILE, B_TILE * S), 1)
    seq_pos = col_i - row_i * S                       # position inside row b's block
    own_blk = (seq_pos >= 0) & (seq_pos < S)          # block-diagonal selector
    valid = seq_pos < vlen_ref[...]                   # (B_TILE,1) broadcast over lanes
    pool_mat = jnp.where(own_blk & valid, inv_ref[...], 0.0)

    # Masked mean pool as one MXU contraction: (B_TILE, B_TILE*S) @ (B_TILE*S, H)
    pooled = jnp.dot(pool_mat, x_ref[...], preferred_element_type=jnp.float32)

    # Pooler dense + tanh (bias = one broadcast VPU add).
    h = jnp.tanh(jnp.dot(pooled, wp_ref[...], preferred_element_type=jnp.float32)
                 + bp_ref[...])

    # TODO(synk): dropout skipped — module default dr_rate=None; would use
    # pltpu.prng_seed / pltpu.prng_random_bits if enabled.

    # Classifier; lane-dense (B_TILE, CP) store, class padding sliced outside.
    out_ref[...] = (jnp.dot(h, wc_ref[...], preferred_element_type=jnp.float32)
                    + bc_ref[...])


# ------------------------- one-time parameter prep ----------------------------
def prepare_params(wp, bp, wc, bc):
    """Lane-pad the classifier head and reshape biases ONCE at model init.

    Padded lanes are exactly zero, so sliced logits match the unpadded math.
    """
    wp_f = wp.astype(jnp.float32)                                   # (H, H)
    bp_row = bp.astype(jnp.float32).reshape(1, H)                   # (1, H)
    wc_pad = jnp.zeros((H, CP), jnp.float32).at[:, :C].set(wc)      # (H, CP)
    bc_pad = jnp.zeros((1, CP), jnp.float32).at[0, :C].set(bc)      # (1, CP)
    return wp_f, bp_row, wc_pad, bc_pad


# ------------------------------- forward wrapper ------------------------------
@jax.jit
def bert_classifier_pallas(x_emb, valid_length, params):
    wp_f, bp_row, wc_pad, bc_pad = params
    Bv, Sv, Hv = x_emb.shape
    assert Sv == S and Hv == H

    # Batch-pad rows only (no lane padding of activations).
    Bp = ((Bv + B_TILE - 1) // B_TILE) * B_TILE
    x_rows = (jnp.zeros((Bp * Sv, Hv), jnp.float32)
              .at[:Bv * Sv, :].set(x_emb.reshape(Bv * Sv, Hv).astype(jnp.float32)))

    vlen_i = (jnp.zeros((Bp, 1), jnp.int32)
              .at[:Bv, 0].set(valid_length.astype(jnp.int32)))
    # Exact reciprocal computed once in the wrapper (guarded against vlen==0).
    inv_vlen = (jnp.zeros((Bp, 1), jnp.float32)
                .at[:Bv, 0].set(1.0 / jnp.maximum(valid_length.astype(jnp.float32),
                                                  1.0)))

    grid_spec = pltpu.PrefetchScalarGridSpec(
        num_scalar_prefetch=0,                 # vlen is not used in any index_map
        grid=(Bp // B_TILE,),                  # batch tiles (parallel; splits across
                                               # v7x's two TCs once Bv >= 16)
        in_specs=[
            pl.BlockSpec((B_TILE, 1), lambda i: (i, 0)),        # vlen
            pl.BlockSpec((B_TILE, 1), lambda i: (i, 0)),        # 1/vlen
            pl.BlockSpec((B_TILE * Sv, Hv), lambda i: (i, 0)),  # x rows
            pl.BlockSpec((H, H), lambda i: (0, 0)),             # wp
            pl.BlockSpec((1, H), lambda i: (0, 0)),             # bp
            pl.BlockSpec((H, CP), lambda i: (0, 0)),            # wc (lane-padded)
            pl.BlockSpec((1, CP), lambda i: (0, 0)),            # bc (lane-padded)
        ],
        out_specs=pl.BlockSpec((B_TILE, CP), lambda i: (i, 0)),
    )

    out = pl.pallas_call(
        bert_classifier_kernel,
        out_shape=jax.ShapeDtypeStruct((Bp, CP), jnp.float32),
        grid_spec=grid_spec,
        compiler_params=pltpu.CompilerParams(
            dimension_semantics=("parallel",)),
    )(vlen_i, inv_vlen, x_rows, wp_f, bp_row, wc_pad, bc_pad)

    # Slice away batch / class padding.
    return out[:Bv, :C]


# --------------------------- plain-JAX reference ------------------------------
def reference(x_emb, valid_length, wp, bp, wc, bc):
    vlen = valid_length.astype(jnp.float32)[:, None]
    pos = jnp.arange(S, dtype=jnp.float32)[None, :]
    mask = (pos < vlen).astype(jnp.float32)
    pooled = jnp.sum(x_emb * mask[:, :, None], axis=1) / jnp.maximum(vlen, 1.0)
    h = jnp.tanh(pooled @ wp + bp)
    return h @ wc + bc


if __name__ == "__main__":
    key = jax.random.PRNGKey(0)
    k_tok, k_seg, k_temb, k_semb, k_wp, k_bp, k_wc, k_bc = jax.random.split(key, 8)

    # inputs (what BERTClassifier.forward receives)
    token_ids = jax.random.randint(k_tok, (B, S), 0, VOCAB, dtype=jnp.int32)
    valid_length = jnp.array([5, 8], dtype=jnp.int32)
    segment_ids = jax.random.randint(k_seg, (B, S), 0, N_SEG, dtype=jnp.int32)

    # deterministic synthetic parameters
    tok_emb = jax.random.normal(k_temb, (VOCAB, H), dtype=jnp.float32) * 0.02
    seg_emb = jax.random.normal(k_semb, (N_SEG, H), dtype=jnp.float32) * 0.02
    wp = jax.random.normal(k_wp, (H, H), dtype=jnp.float32) * 0.05
    bp = jax.random.normal(k_bp, (H,), dtype=jnp.float32) * 0.05
    wc = jax.random.normal(k_wc, (H, C), dtype=jnp.float32) * 0.05
    bc = jax.random.normal(k_bc, (C,), dtype=jnp.float32) * 0.05

    # one-time weight prep (hoisted out of the per-call path)
    params = jax.tree_util.tree_map(jax.block_until_ready, prepare_params(wp, bp, wc, bc))

    # glue: embedding lookup (gather) stays in plain JAX at toy sizes
    x_emb = tok_emb[token_ids] + seg_emb[segment_ids]        # (B, S, H)

    logits = bert_classifier_pallas(x_emb, valid_length, params)
    logits = jax.block_until_ready(logits)

    ref = reference(x_emb, valid_length, wp, bp, wc, bc)
    assert logits.shape == (B, C)
    assert jnp.allclose(logits, ref, atol=1e-3, rtol=1e-3), "mismatch vs reference"

    print("KERNEL_OK")
</pallas_src>

<mosaic_0001>
module attributes {stable_mosaic.version = 11 : i64} {
  func.func @bert_classifier_kernel(%arg0: i32, %arg1: memref<8x1xi32, #tpu.memory_space<vmem>>, %arg2: memref<8x1xf32, #tpu.memory_space<vmem>>, %arg3: memref<64x32xf32, #tpu.memory_space<vmem>>, %arg4: memref<32x32xf32, #tpu.memory_space<vmem>>, %arg5: memref<1x32xf32, #tpu.memory_space<vmem>>, %arg6: memref<32x128xf32, #tpu.memory_space<vmem>>, %arg7: memref<1x128xf32, #tpu.memory_space<vmem>>, %arg8: memref<8x128xf32, #tpu.memory_space<vmem>>) attributes {dimension_semantics = [#tpu.dimension_semantics<parallel>], iteration_bounds = array<i64: 1>, scalar_prefetch = 0 : i64, scratch_operands = 0 : i64, tpu.core_type = #tpu.core_type<tc>, window_params = [{transform_indices = @transform_0, window_bounds = array<i64: 8, 1>}, {transform_indices = @transform_1, window_bounds = array<i64: 8, 1>}, {transform_indices = @transform_2, window_bounds = array<i64: 64, 32>}, {pipeline_mode = #tpu.pipeline_mode<synchronous>, transform_indices = @transform_3, window_bounds = array<i64: 32, 32>}, {pipeline_mode = #tpu.pipeline_mode<synchronous>, transform_indices = @transform_4, window_bounds = array<i64: 1, 32>}, {pipeline_mode = #tpu.pipeline_mode<synchronous>, transform_indices = @transform_5, window_bounds = array<i64: 32, 128>}, {pipeline_mode = #tpu.pipeline_mode<synchronous>, transform_indices = @transform_6, window_bounds = array<i64: 1, 128>}, {transform_indices = @transform_7, window_bounds = array<i64: 8, 128>}]} {
    %0 = tpu.iota {dimensions = array<i32: 0>} : vector<8x64xi32>
    %1 = tpu.iota {dimensions = array<i32: 1>} : vector<8x64xi32>
    %c8_i32 = arith.constant 8 : i32
    %2 = vector.broadcast %c8_i32 : i32 to vector<8x64xi32>
    %3 = arith.muli %0, %2 : vector<8x64xi32>
    %4 = arith.subi %1, %3 : vector<8x64xi32>
    %c0_i32 = arith.constant 0 : i32
    %5 = vector.broadcast %c0_i32 : i32 to vector<8x64xi32>
    %6 = arith.cmpi sge, %4, %5 : vector<8x64xi32>
    %c8_i32_0 = arith.constant 8 : i32
    %7 = vector.broadcast %c8_i32_0 : i32 to vector<8x64xi32>
    %8 = arith.cmpi slt, %4, %7 : vector<8x64xi32>
    %9 = arith.andi %6, %8 : vector<8x64xi1>
    %c0 = arith.constant 0 : index
    %c0_1 = arith.constant 0 : index
    %10 = vector.load %arg1[%c0, %c0_1] : memref<8x1xi32, #tpu.memory_space<vmem>>, vector<8x1xi32>
    %11 = vector.broadcast %10 : vector<8x1xi32> to vector<8x64xi32>
    %12 = arith.cmpi slt, %4, %11 : vector<8x64xi32>
    %13 = arith.andi %9, %12 : vector<8x64xi1>
    %c0_2 = arith.constant 0 : index
    %c0_3 = arith.constant 0 : index
    %14 = vector.load %arg2[%c0_2, %c0_3] : memref<8x1xf32, #tpu.memory_space<vmem>>, vector<8x1xf32>
    %cst = arith.constant 0.000000e+00 : f32
    %15 = vector.shape_cast %14 : vector<8x1xf32> to vector<8x1xf32>
    %16 = vector.broadcast %15 : vector<8x1xf32> to vector<8x64xf32>
    %17 = vector.broadcast %cst : f32 to vector<8x64xf32>
    %18 = arith.select %13, %16, %17 : vector<8x64xi1>, vector<8x64xf32>
    %c0_4 = arith.constant 0 : index
    %c0_5 = arith.constant 0 : index
    %19 = vector.load %arg3[%c0_4, %c0_5] : memref<64x32xf32, #tpu.memory_space<vmem>>, vector<64x32xf32>
    %cst_6 = arith.constant dense<0.000000e+00> : vector<8x32xf32>
    %20 = tpu.matmul %18, %19, %cst_6 {dimension_numbers = #tpu.dot_dimension_numbers<[1], [0], [0], [1], [0, 0, 1, 1], [], []>} : vector<8x64xf32>, vector<64x32xf32>, vector<8x32xf32> -> vector<8x32xf32>
    %c0_7 = arith.constant 0 : index
    %c0_8 = arith.constant 0 : index
    %21 = vector.load %arg4[%c0_7, %c0_8] : memref<32x32xf32, #tpu.memory_space<vmem>>, vector<32x32xf32>
    %cst_9 = arith.constant dense<0.000000e+00> : vector<8x32xf32>
    %22 = tpu.matmul %20, %21, %cst_9 {dimension_numbers = #tpu.dot_dimension_numbers<[1], [0], [0], [1], [0, 0, 1, 1], [], []>} : vector<8x32xf32>, vector<32x32xf32>, vector<8x32xf32> -> vector<8x32xf32>
    %c0_10 = arith.constant 0 : index
    %c0_11 = arith.constant 0 : index
    %23 = vector.load %arg5[%c0_10, %c0_11] : memref<1x32xf32, #tpu.memory_space<vmem>>, vector<1x32xf32>
    %24 = vector.broadcast %23 : vector<1x32xf32> to vector<8x32xf32>
    %25 = arith.addf %22, %24 : vector<8x32xf32>
    %26 = math.tanh %25 : vector<8x32xf32>
    %c0_12 = arith.constant 0 : index
    %c0_13 = arith.constant 0 : index
    %27 = vector.load %arg6[%c0_12, %c0_13] : memref<32x128xf32, #tpu.memory_space<vmem>>, vector<32x128xf32>
    %cst_14 = arith.constant dense<0.000000e+00> : vector<8x128xf32>
    %28 = tpu.matmul %26, %27, %cst_14 {dimension_numbers = #tpu.dot_dimension_numbers<[1], [0], [0], [1], [0, 0, 1, 1], [], []>} : vector<8x32xf32>, vector<32x128xf32>, vector<8x128xf32> -> vector<8x128xf32>
    %c0_15 = arith.constant 0 : index
    %c0_16 = arith.constant 0 : index
    %29 = vector.load %arg7[%c0_15, %c0_16] : memref<1x128xf32, #tpu.memory_space<vmem>>, vector<1x128xf32>
    %30 = vector.broadcast %29 : vector<1x128xf32> to vector<8x128xf32>
    %31 = arith.addf %28, %30 : vector<8x128xf32>
    %c0_17 = arith.constant 0 : index
    %c0_18 = arith.constant 0 : index
    %32 = vector.load %arg8[%c0_17, %c0_18] : memref<8x128xf32, #tpu.memory_space<vmem>>, vector<8x128xf32>
    tpu.vector_store %arg8[%c0_17, %c0_18], %31 {strides = array<i32>} : memref<8x128xf32, #tpu.memory_space<vmem>>, vector<8x128xf32>,
    return
  }
  func.func @transform_0(%arg0: i32) -> (i32, i32) {
    %c0_i32 = arith.constant 0 : i32
    %c0_i32_0 = arith.constant 0 : i32
    return %arg0, %c0_i32 : i32, i32
  }
  func.func @transform_1(%arg0: i32) -> (i32, i32) {
    %c0_i32 = arith.constant 0 : i32
    %c0_i32_0 = arith.constant 0 : i32
    return %arg0, %c0_i32 : i32, i32
  }
  func.func @transform_2(%arg0: i32) -> (i32, i32) {
    %c0_i32 = arith.constant 0 : i32
    %c0_i32_0 = arith.constant 0 : i32
    return %arg0, %c0_i32 : i32, i32
  }
  func.func @transform_3(%arg0: i32) -> (i32, i32) {
    %c0_i32 = arith.constant 0 : i32
    %c0_i32_0 = arith.constant 0 : i32
    %c0_i32_1 = arith.constant 0 : i32
    return %c0_i32, %c0_i32_0 : i32, i32
  }
  func.func @transform_4(%arg0: i32) -> (i32, i32) {
    %c0_i32 = arith.constant 0 : i32
    %c0_i32_0 = arith.constant 0 : i32
    %c0_i32_1 = arith.constant 0 : i32
    return %c0_i32, %c0_i32_0 : i32, i32
  }
  func.func @transform_5(%arg0: i32) -> (i32, i32) {
    %c0_i32 = arith.constant 0 : i32
    %c0_i32_0 = arith.constant 0 : i32
    %c0_i32_1 = arith.constant 0 : i32
    return %c0_i32, %c0_i32_0 : i32, i32
  }
  func.func @transform_6(%arg0: i32) -> (i32, i32) {
    %c0_i32 = arith.constant 0 : i32
    %c0_i32_0 = arith.constant 0 : i32
    %c0_i32_1 = arith.constant 0 : i32
    return %c0_i32, %c0_i32_0 : i32, i32
  }
  func.func @transform_7(%arg0: i32) -> (i32, i32) {
    %c0_i32 = arith.constant 0 : i32
    %c0_i32_0 = arith.constant 0 : i32
    return %arg0, %c0_i32 : i32, i32
  }
}

</mosaic_0001>

<bundles_post_ra>
// kernel: bert_classifier_pallas.1
= control target key start
LH: loop header
LB: loop body
LE: loop exit
PB: predicated region body
PF: predicated region fallthrough
CT: control target
= control target key end

     0   :  { %v401_v0 = vmov 0   ;;  %v402_v2 = vmov 0.0|0.0   ;;  %vm403_vm0 = vmmov 0   ;;  %v404_v12 = vmov 0.0   ;;  %s521_s0 = inlined_call_operand.vmem [shape: s32[8,1], index: 0, kind: input, shape index: {}]   ;;  %s522_s1 = inlined_call_operand.vmem [shape: f32[8,1], index: 1, kind: input, shape index: {}]   ;;  %s523_s2 = inlined_call_operand.vmem [shape: f32[64,32], index: 2, kind: input, shape index: {}]   ;;  %s524_s3 = inlined_call_operand.vmem [shape: f32[32,32], index: 3, kind: input, shape index: {}]   ;;  %s525_s5 = inlined_call_operand.vmem [shape: f32[32,128], index: 5, kind: input, shape index: {}]   ;;  %s526_s4 = inlined_call_operand.vmem [shape: f32[1,32], index: 4, kind: input, shape index: {}]   ;;  %s527_s6 = inlined_call_operand.vmem [shape: f32[1,128], index: 6, kind: input, shape index: {}]   ;;  %s528_s7 = inlined_call_operand.vmem [shape: f32[8,128], index: 7, kind: output, shape index: {}]  }
   0x1   :  { %398 = vset.pattern.permute.xlu0 %v401_v0  ;;  %v35_v1 = vld [vmem:[%s521_s0] sm:$0xff]  ;;  %370 = vmatprep.subr.bf16.mxu0 %v402_v2  ;;  %v49_v4 = vld [vmem:[%s523_s2 + $0x8] sm:$0xff]  ;;  %v50_v5 = vld [vmem:[%s523_s2 + $0x10] sm:$0xff]  ;;  %v26_v23 = vlaneseq  ;;  %vm56_vm5 = vcmask 523264   ;;  %vm141_vm7 = vcmask 261120  }
   0x2   :  { %v48_v3 = vld [vmem:[%s523_s2] sm:$0xff]  ;;  %37 = vperm.xlu0 %398, %v35_v1   ;;  %v51_v6 = vld [vmem:[%s523_s2 + $0x18] sm:$0xff]  ;;  %382 = vmatprep.subr.bf16.mxu1 %v402_v2  ;;  %v53_v11 = vld [vmem:[%s523_s2 + $0x28] sm:$0xff] }
   0x3   :  { %v41_v7 = vld [vmem:[%s522_s1] sm:$0xff]  ;;  %v371_v8 = vpack.c.bf16 %v49_v4, %v48_v3  ;;  %v374_v9 = vpack.c.bf16 %v51_v6, %v50_v5  ;;  %345 = vmatprep.mubr.msk.f32.mxu0 %vm403_vm0, %v404_v12  ;;  %356 = vmatprep.mubr.msk.f32.mxu1 %vm403_vm0, %v404_v12  ;;  %v131_v14 = vld [vmem:[%s524_s3 + $0x8] sm:$0xff]  ;;  %v132_v15 = vld [vmem:[%s524_s3 + $0x10] sm:$0xff]  ;;  %v27_v24 = vshrl.u32 %v26_v23, 7  ;;  %v29_v25 = vand.u32 127, %v26_v23 }
   0x4   :  { %v52_v10 = vld [vmem:[%s523_s2 + $0x20] sm:$0xff]  ;;  %v133_v18 = vld [vmem:[%s524_s3 + $0x18] sm:$0xff]  ;;  %v54_v19 = vld [vmem:[%s523_s2 + $0x30] sm:$0xff] }
   0x5   :  { %372 = vmatpush3.bf16.msra.mxu0 %v371_v8  ;;  %v130_v13 = vld [vmem:[%s524_s3] sm:$0xff]  ;;  %v377_v16 = vpack.c.bf16 %v53_v11, %v52_v10  ;;  %v55_v20 = vld [vmem:[%s523_s2 + $0x38] sm:$0xff]  ;;  %v386_v21 = vpack.c.bf16 %v133_v18, %v132_v15  ;;  %v30_v26 = vmul.u32 8, %v27_v24  ;;  %v217_v34 = vld [vmem:[%s525_s5 + $0x8] sm:$0xff] }
   0x6   :  { %44 = vperm.xlu0 %398, %v41_v7   ;;  %373 = vmatprep.subr.bf16.mxu0 %v402_v2  ;;  %v383_v17 = vpack.c.bf16 %v131_v14, %v130_v13  ;;  %v380_v22 = vpack.c.bf16 %v55_v20, %v54_v19  ;;  %v216_v33 = vld [vmem:[%s525_s5] sm:$0xff]  ;;  %v218_v35 = vld [vmem:[%s525_s5 + $0x10] sm:$0xff]  ;;  %v219_v37 = vld [vmem:[%s525_s5 + $0x18] sm:$0xff] }
   0x7   :  { %v31_v27 = vsub.s32 %v29_v25, %v30_v26  ;;  %v389_v36 = vpack.c.bf16 %v217_v34, %v216_v33  ;;  %v392_v38 = vpack.c.bf16 %v219_v37, %v218_v35  ;;  %v306_v39 = vld [vmem:[%s526_s4] ss:$0 sm:$0xff] }
   0x8   :  { %384 = vmatpush3.bf16.msra.mxu1 %v383_v17  ;;  %v308_v44 = vld [vmem:[%s527_s6] ss:$0 sm:$0xff] }
   0x9   :  { %375 = vmatpush3.bf16.msra.mxu0 %v374_v9  ;;  %385 = vmatprep.subr.bf16.mxu1 %v402_v2  ;;  %vm32_vm1 = vcmp.ge.s32.totalorder %v31_v27, 0  ;;  %vm33_vm2 = vcmp.lt.s32.totalorder %v31_v27, 8 }
   0xa   :  { %376 = vmatprep.subr.bf16.mxu0 %v402_v2  ;;  %vm34_vm4 = vmand %vm32_vm1, %vm33_vm2 }
   0xc   :  { %387 = vmatpush3.bf16.msra.mxu1 %v386_v21 }
   0xd   :  { %378 = vmatpush3.bf16.msra.mxu0 %v377_v16  ;;  %388 = vmatprep.subr.bf16.mxu1 %v402_v2 }
   0xe   :  { %379 = vmatprep.subr.bf16.mxu0 %v402_v2 }
  0x11   :  { %381 = vmatpush3.bf16.msra.mxu0 %v380_v22 }
  0x81   :  { %v38_v28 = vpop.permute.xlu0 %37 }
  0x82   :  { %vm39_vm3 = vcmp.lt.s32.totalorder %v31_v27, %v38_v28 }
  0x83   :  { %vm40_vm6 = vmand %vm34_vm4, %vm39_vm3 }
  0x85   :  { %v45_v29 = vpop.permute.xlu0 %44 }
  0x86   :  { %v47_v30 = vsel %vm40_vm6, %v45_v29, 0.0 }
  0x87   :  { %346 = vmatmul.mubr.msk.f32.vlgmr.msra.gmra.mrb[0].mxu0 %vm56_vm5, %v47_v30 }
 0x15a   :  { %v126_v31 = vpop.f32.mrb[0].mxu0 }
 0x15b   :  { %v347_v32 = vpop.f32.mrb[1].mxu0  ;;  %357 = vmatmul.mubr.msk.f32.vlgmr.msra.gmra.mrb[0].mxu1 %vm141_vm7, %v126_v31 }
 0x15c   :  { %367 = vmatprep.mubr.msk.f32.mxu1 %vm403_vm0, %v404_v12  ;;  %390 = vmatpush3.bf16.msra.mxu1 %v389_v36 }
 0x15d   :  { %391 = vmatprep.subr.bf16.mxu1 %v402_v2 }
 0x160   :  { %393 = vmatpush3.bf16.msra.mxu1 %v392_v38 }
 0x22e   :  { %v211_v40 = vpop.f32.mrb[0].mxu1 }
 0x22f   :  { %v212_v41 = vadd.f32 %v306_v39, %v211_v40  ;;  %v358_v42 = vpop.f32.mrb[1].mxu1 }
 0x231   :  { %399 = vtanh.f32 %v212_v41 }
 0x23b   :  { %v400_v43 = vpop.eup %399 }
 0x23c   :  { %368 = vmatmul.mubr.msk.f32.vlgmr.msra.gmra.mrb[2].mxu1 %vm141_vm7, %v400_v43 }
 0x30f   :  { %v296_v45 = vpop.f32.mrb[2].mxu1 }
 0x310   :  { %v297_v46 = vadd.f32 %v308_v44, %v296_v45  ;;  %v369_v47 = vpop.f32.mrb[3].mxu1 }
 0x312   :  { %300 = vst [vmem:[%s528_s7] sm:$0xff] %v297_v46 }

</bundles_post_ra>
